<compile_context>
chip_gen: v6e
topology: v6e:2x2x1
jax: 0.10.0
libtpu: 0.0.40
codegen_flags: <defaults>
</compile_context>

<pallas_src>
import functools

import jax
import jax.numpy as jnp
from jax.experimental import pallas as pl
from jax.experimental.pallas import tpu as pltpu


def _round_up(x, m):
    return ((x + m - 1) // m) * m


def _retanh(x):
    return jnp.maximum(jnp.tanh(x), 0.0)


def _ctrnn_kernel(drive_ref, noise_ref, ah0_ref, wahh_t_ref, act_ref,
                  ah_scratch, h_scratch, *, alpha, t_blk):
    """One (trial_block, time_block) tile of the recurrence.

    drive_ref : (T_BLK, TRIAL_BLK, n_rec_p)  = alpha * (x @ Wahx^T + bah), precomputed
    noise_ref : (T_BLK, TRIAL_BLK, n_rec_p)
    ah0_ref   : (1, n_rec_p)
    wahh_t_ref: (n_rec_p, n_rec_p)           = (alpha * Wahh)^T, pre-scaled
    act_ref   : (T_BLK, TRIAL_BLK, n_rec_p)  output activity
    """
    tb = pl.program_id(1)  # time-block index (serial axis)

    # (Re)initialize recurrent state at the start of each trial block's time loop.
    @pl.when(tb == 0)
    def _():
        n_tr = ah_scratch.shape[0]
        ah0 = ah0_ref[...]                                    # (1, n_rec_p)
        ah_init = jnp.broadcast_to(ah0, (n_tr, ah0.shape[1]))
        ah_scratch[...] = ah_init
        h_scratch[...] = _retanh(ah_init)

    ah = ah_scratch[...]          # (TRIAL_BLK, n_rec_p)
    h = h_scratch[...]            # (TRIAL_BLK, n_rec_p)
    w = wahh_t_ref[...]           # (n_rec_p, n_rec_p), already scaled by alpha
    one_minus_alpha = 1.0 - alpha

    # Statically-unrolled inner time loop: small, fixed trip count; static slices.
    for i in range(t_blk):
        rec = jnp.dot(h, w, preferred_element_type=jnp.float32)
        ah = one_minus_alpha * ah + rec + drive_ref[i]
        h = _retanh(ah) + noise_ref[i]
        act_ref[i] = h

    ah_scratch[...] = ah
    h_scratch[...] = h


def ctrnn_forward(input_x, activity_noise, params, *, dt=1.0, tau=10.0,
                  t_blk=8, max_trial_blk=256):
    """Pallas CTRNN forward.

    input_x:        (n_trials, n_T, n_input)  or (n_T, n_input)
    activity_noise: (n_trials, n_T, n_rec)    or (n_T, n_rec)
    params: Wahx (n_rec, n_in), Wahh (n_rec, n_rec), Wyh (n_out, n_rec),
            bah (n_rec,), by (n_out,), ah0 (n_rec,)
    Returns {'output': (n_trials, n_T, n_out), 'activity': (n_trials, n_T, n_rec)}.
    """
    if input_x.ndim == 2:
        input_x = input_x[None, :, :]
        activity_noise = activity_noise[None, :, :]

    n_trials, n_T, n_input = input_x.shape
    n_rec = params["Wahh"].shape[0]
    n_out = params["Wyh"].shape[0]
    alpha = float(dt) / float(tau)

    # ---- padded / blocked sizes -------------------------------------------------
    n_rec_p = _round_up(n_rec, 128)                    # lane-dense recurrent dim
    trial_blk = min(max_trial_blk, _round_up(n_trials, 8))
    n_trials_p = _round_up(n_trials, trial_blk)
    t_blk = max(1, min(t_blk, n_T))
    n_T_p = _round_up(n_T, t_blk)

    f32 = jnp.float32
    x32 = input_x.astype(f32)
    noise32 = activity_noise.astype(f32)

    # ---- pad parameters along the recurrent dimension (zero pad is inert) -------
    wahx_p = jnp.zeros((n_rec_p, n_input), f32).at[:n_rec, :].set(params["Wahx"].astype(f32))
    wahh_p = jnp.zeros((n_rec_p, n_rec_p), f32).at[:n_rec, :n_rec].set(params["Wahh"].astype(f32))
    bah_p = jnp.zeros((n_rec_p,), f32).at[:n_rec].set(params["bah"].astype(f32))
    ah0_p = jnp.zeros((n_rec_p,), f32).at[:n_rec].set(params["ah0"].astype(f32))
    wyh = params["Wyh"].astype(f32)                    # (n_out, n_rec) - used outside kernel
    by = params["by"].astype(f32)                      # (n_out,)

    # ---- hoist the input projection out of the serial loop (time-major) ---------
    # drive[t, b, r] = alpha * (x[b, t] @ Wahx^T + bah)
    drive_tm = alpha * (jnp.einsum("btd,rd->tbr", x32, wahx_p,
                                   preferred_element_type=f32)
                        + bah_p[None, None, :])        # (n_T, n_trials, n_rec_p)
    drive_tm = jnp.pad(drive_tm,
                       ((0, n_T_p - n_T), (0, n_trials_p - n_trials), (0, 0)))

    noise_tm = jnp.transpose(noise32, (1, 0, 2))       # (n_T, n_trials, n_rec)
    noise_tm = jnp.pad(noise_tm,
                       ((0, n_T_p - n_T), (0, n_trials_p - n_trials),
                        (0, n_rec_p - n_rec)))

    # Fold dt/Tau into the recurrent weight once.
    wahh_scaled_t = (alpha * wahh_p).T                 # (n_rec_p, n_rec_p)
    ah0_2d = ah0_p.reshape(1, n_rec_p)

    n_trial_blocks = n_trials_p // trial_blk
    n_time_blocks = n_T_p // t_blk

    kernel = functools.partial(_ctrnn_kernel, alpha=alpha, t_blk=t_blk)

    grid_spec = pltpu.PrefetchScalarGridSpec(
        num_scalar_prefetch=0,
        grid=(n_trial_blocks, n_time_blocks),
        in_specs=[
            pl.BlockSpec((t_blk, trial_blk, n_rec_p), lambda b, t: (t, b, 0)),  # drive
            pl.BlockSpec((t_blk, trial_blk, n_rec_p), lambda b, t: (t, b, 0)),  # noise
            pl.BlockSpec((1, n_rec_p), lambda b, t: (0, 0)),                    # ah0
            pl.BlockSpec((n_rec_p, n_rec_p), lambda b, t: (0, 0)),              # (a*Wahh)^T
        ],
        out_specs=pl.BlockSpec((t_blk, trial_blk, n_rec_p), lambda b, t: (t, b, 0)),
        scratch_shapes=[
            pltpu.VMEM((trial_blk, n_rec_p), jnp.float32),   # ah carry
            pltpu.VMEM((trial_blk, n_rec_p), jnp.float32),   # h carry
        ],
    )

    act_tm = pl.pallas_call(
        kernel,
        out_shape=jax.ShapeDtypeStruct((n_T_p, n_trials_p, n_rec_p), jnp.float32),
        grid_spec=grid_spec,
        compiler_params=pltpu.CompilerParams(
            # trials are independent (parallel / megacore); time is the serial recurrence
            dimension_semantics=("parallel", "arbitrary")),
    )(drive_tm, noise_tm, ah0_2d, wahh_scaled_t)

    # ---- slice padding away, restore batch-major layout --------------------------
    activity = jnp.transpose(act_tm[:n_T, :n_trials, :n_rec], (1, 0, 2))  # (n_trials, n_T, n_rec)

    # Readout hoisted out of the serial kernel: one big, well-tiled matmul.
    output = jnp.einsum("btr,or->bto", activity, wyh,
                        preferred_element_type=f32) + by[None, None, :]

    return {"output": output, "activity": activity}


def _ctrnn_reference(input_x, activity_noise, params, *, dt=1.0, tau=10.0):
    """Pure-JAX reference matching the PyTorch forward."""
    n_trials, n_T, _ = input_x.shape
    Wahx, Wahh, Wyh = params["Wahx"], params["Wahh"], params["Wyh"]
    bah, by, ah0 = params["bah"], params["by"], params["ah0"]
    ah = jnp.broadcast_to(ah0[None, :], (n_trials, ah0.shape[0]))
    h = jnp.maximum(jnp.tanh(ah), 0.0)
    hs = []
    for t in range(n_T):
        ah = ah + dt / tau * (-ah + h @ Wahh.T + input_x[:, t] @ Wahx.T + bah)
        h = jnp.maximum(jnp.tanh(ah), 0.0) + activity_noise[:, t, :]
        hs.append(h)
    hstore = jnp.stack(hs, axis=1)
    return {"output": hstore @ Wyh.T + by, "activity": hstore}


if __name__ == "__main__":
    # Small deterministic example shapes.
    n_trials, n_T = 2, 8
    n_input, n_recurrent, n_output = 4, 32, 3
    dt, Tau = 1.0, 10.0

    key = jax.random.PRNGKey(0)
    k = jax.random.split(key, 8)

    bx = 1.0 / jnp.sqrt(n_input)
    bh = 1.0 / jnp.sqrt(n_recurrent)
    params = {
        "Wahx": jax.random.uniform(k[0], (n_recurrent, n_input), jnp.float32, -bx, bx),
        "bah":  jax.random.uniform(k[1], (n_recurrent,), jnp.float32, -bx, bx),
        "Wahh": jax.random.uniform(k[2], (n_recurrent, n_recurrent), jnp.float32, -bh, bh),
        "Wyh":  jax.random.uniform(k[3], (n_output, n_recurrent), jnp.float32, -bh, bh),
        "by":   jax.random.uniform(k[4], (n_output,), jnp.float32, -bh, bh),
        "ah0":  jnp.zeros((n_recurrent,), jnp.float32),
    }

    input_x = jax.random.normal(k[5], (n_trials, n_T, n_input), jnp.float32)
    activity_noise = 0.1 * jax.random.normal(k[6], (n_trials, n_T, n_recurrent), jnp.float32)

    result = ctrnn_forward(input_x, activity_noise, params, dt=dt, tau=Tau)
    jax.block_until_ready(result)

    ref = _ctrnn_reference(input_x, activity_noise, params, dt=dt, tau=Tau)
    assert jnp.allclose(result["activity"], ref["activity"], atol=1e-4, rtol=1e-4)
    assert jnp.allclose(result["output"], ref["output"], atol=1e-4, rtol=1e-4)

    print("KERNEL_OK")
</pallas_src>

<mosaic_0001>
module attributes {stable_mosaic.version = 11 : i64} {
  func.func @_ctrnn_kernel(%arg0: i32, %arg1: i32, %arg2: memref<8x8x128xf32, #tpu.memory_space<vmem>>, %arg3: memref<8x8x128xf32, #tpu.memory_space<vmem>>, %arg4: memref<1x128xf32, #tpu.memory_space<vmem>>, %arg5: memref<128x128xf32, #tpu.memory_space<vmem>>, %arg6: memref<8x8x128xf32, #tpu.memory_space<vmem>>, %arg7: memref<8x128xf32, #tpu.memory_space<vmem>>, %arg8: memref<8x128xf32, #tpu.memory_space<vmem>>) attributes {dimension_semantics = [#tpu.dimension_semantics<parallel>, #tpu.dimension_semantics<arbitrary>], iteration_bounds = array<i64: 1, 1>, scalar_prefetch = 0 : i64, scratch_operands = 2 : i64, tpu.core_type = #tpu.core_type<tc>, window_params = [{transform_indices = @transform_0, window_bounds = array<i64: 8, 8, 128>}, {transform_indices = @transform_1, window_bounds = array<i64: 8, 8, 128>}, {pipeline_mode = #tpu.pipeline_mode<synchronous>, transform_indices = @transform_2, window_bounds = array<i64: 1, 128>}, {pipeline_mode = #tpu.pipeline_mode<synchronous>, transform_indices = @transform_3, window_bounds = array<i64: 128, 128>}, {transform_indices = @transform_4, window_bounds = array<i64: 8, 8, 128>}]} {
    %c0_i32 = arith.constant 0 : i32
    %0 = arith.cmpi eq, %arg1, %c0_i32 : i32
    %1 = arith.extui %0 : i1 to i32
    %c0_i32_0 = arith.constant 0 : i32
    %2 = arith.cmpi ne, %1, %c0_i32_0 : i32
    scf.if %2 {
      %c0_98 = arith.constant 0 : index
      %c0_99 = arith.constant 0 : index
      %136 = vector.load %arg4[%c0_98, %c0_99] : memref<1x128xf32, #tpu.memory_space<vmem>>, vector<1x128xf32>
      %137 = vector.shape_cast %136 : vector<1x128xf32> to vector<1x128xf32>
      %138 = vector.broadcast %137 : vector<1x128xf32> to vector<8x128xf32>
      %c0_100 = arith.constant 0 : index
      %c0_101 = arith.constant 0 : index
      %139 = vector.load %arg7[%c0_100, %c0_101] : memref<8x128xf32, #tpu.memory_space<vmem>>, vector<8x128xf32>
      tpu.vector_store %arg7[%c0_100, %c0_101], %138 {strides = array<i32>} : memref<8x128xf32, #tpu.memory_space<vmem>>, vector<8x128xf32>,
      %140 = math.tanh %138 : vector<8x128xf32>
      %cst_102 = arith.constant 0.000000e+00 : f32
      %141 = vector.broadcast %cst_102 : f32 to vector<8x128xf32>
      %142 = arith.maximumf %140, %141 : vector<8x128xf32>
      %c0_103 = arith.constant 0 : index
      %c0_104 = arith.constant 0 : index
      %143 = vector.load %arg8[%c0_103, %c0_104] : memref<8x128xf32, #tpu.memory_space<vmem>>, vector<8x128xf32>
      tpu.vector_store %arg8[%c0_103, %c0_104], %142 {strides = array<i32>} : memref<8x128xf32, #tpu.memory_space<vmem>>, vector<8x128xf32>,
    } else {
    }
    %c0 = arith.constant 0 : index
    %c0_1 = arith.constant 0 : index
    %3 = vector.load %arg7[%c0, %c0_1] : memref<8x128xf32, #tpu.memory_space<vmem>>, vector<8x128xf32>
    %c0_2 = arith.constant 0 : index
    %c0_3 = arith.constant 0 : index
    %4 = vector.load %arg8[%c0_2, %c0_3] : memref<8x128xf32, #tpu.memory_space<vmem>>, vector<8x128xf32>
    %c0_4 = arith.constant 0 : index
    %c0_5 = arith.constant 0 : index
    %5 = vector.load %arg5[%c0_4, %c0_5] : memref<128x128xf32, #tpu.memory_space<vmem>>, vector<128x128xf32>
    %cst = arith.constant dense<0.000000e+00> : vector<8x128xf32>
    %6 = tpu.matmul %4, %5, %cst {dimension_numbers = #tpu.dot_dimension_numbers<[1], [0], [0], [1], [0, 0, 1, 1], [], []>} : vector<8x128xf32>, vector<128x128xf32>, vector<8x128xf32> -> vector<8x128xf32>
    %cst_6 = arith.constant 0.899999976 : f32
    %7 = vector.broadcast %cst_6 : f32 to vector<8x128xf32>
    %8 = arith.mulf %7, %3 : vector<8x128xf32>
    %9 = arith.addf %8, %6 : vector<8x128xf32>
    %c0_7 = arith.constant 0 : index
    %c0_8 = arith.constant 0 : index
    %c0_9 = arith.constant 0 : index
    %10 = vector.load %arg2[%c0_7, %c0_8, %c0_9] : memref<8x8x128xf32, #tpu.memory_space<vmem>>, vector<1x8x128xf32>
    %11 = vector.shape_cast %10 : vector<1x8x128xf32> to vector<8x128xf32>
    %12 = arith.addf %9, %11 : vector<8x128xf32>
    %13 = math.tanh %12 : vector<8x128xf32>
    %cst_10 = arith.constant 0.000000e+00 : f32
    %14 = vector.broadcast %cst_10 : f32 to vector<8x128xf32>
    %15 = arith.maximumf %13, %14 : vector<8x128xf32>
    %c0_11 = arith.constant 0 : index
    %c0_12 = arith.constant 0 : index
    %c0_13 = arith.constant 0 : index
    %16 = vector.load %arg3[%c0_11, %c0_12, %c0_13] : memref<8x8x128xf32, #tpu.memory_space<vmem>>, vector<1x8x128xf32>
    %17 = vector.shape_cast %16 : vector<1x8x128xf32> to vector<8x128xf32>
    %18 = arith.addf %15, %17 : vector<8x128xf32>
    %c0_14 = arith.constant 0 : index
    %c0_15 = arith.constant 0 : index
    %c0_16 = arith.constant 0 : index
    %19 = vector.load %arg6[%c0_14, %c0_15, %c0_16] : memref<8x8x128xf32, #tpu.memory_space<vmem>>, vector<1x8x128xf32>
    %20 = vector.shape_cast %19 : vector<1x8x128xf32> to vector<8x128xf32>
    %21 = vector.shape_cast %18 : vector<8x128xf32> to vector<1x8x128xf32>
    tpu.vector_store %arg6[%c0_14, %c0_15, %c0_16], %21 {strides = array<i32>} : memref<8x8x128xf32, #tpu.memory_space<vmem>>, vector<1x8x128xf32>,
    %cst_17 = arith.constant dense<0.000000e+00> : vector<8x128xf32>
    %22 = tpu.matmul %18, %5, %cst_17 {dimension_numbers = #tpu.dot_dimension_numbers<[1], [0], [0], [1], [0, 0, 1, 1], [], []>} : vector<8x128xf32>, vector<128x128xf32>, vector<8x128xf32> -> vector<8x128xf32>
    %cst_18 = arith.constant 0.899999976 : f32
    %23 = vector.broadcast %cst_18 : f32 to vector<8x128xf32>
    %24 = arith.mulf %23, %12 : vector<8x128xf32>
    %25 = arith.addf %24, %22 : vector<8x128xf32>
    %c1 = arith.constant 1 : index
    %c0_19 = arith.constant 0 : index
    %c0_20 = arith.constant 0 : index
    %26 = vector.load %arg2[%c1, %c0_19, %c0_20] : memref<8x8x128xf32, #tpu.memory_space<vmem>>, vector<1x8x128xf32>
    %27 = vector.shape_cast %26 : vector<1x8x128xf32> to vector<8x128xf32>
    %28 = arith.addf %25, %27 : vector<8x128xf32>
    %29 = math.tanh %28 : vector<8x128xf32>
    %cst_21 = arith.constant 0.000000e+00 : f32
    %30 = vector.broadcast %cst_21 : f32 to vector<8x128xf32>
    %31 = arith.maximumf %29, %30 : vector<8x128xf32>
    %c1_22 = arith.constant 1 : index
    %c0_23 = arith.constant 0 : index
    %c0_24 = arith.constant 0 : index
    %32 = vector.load %arg3[%c1_22, %c0_23, %c0_24] : memref<8x8x128xf32, #tpu.memory_space<vmem>>, vector<1x8x128xf32>
    %33 = vector.shape_cast %32 : vector<1x8x128xf32> to vector<8x128xf32>
    %34 = arith.addf %31, %33 : vector<8x128xf32>
    %c1_25 = arith.constant 1 : index
    %c0_26 = arith.constant 0 : index
    %c0_27 = arith.constant 0 : index
    %35 = vector.load %arg6[%c1_25, %c0_26, %c0_27] : memref<8x8x128xf32, #tpu.memory_space<vmem>>, vector<1x8x128xf32>
    %36 = vector.shape_cast %35 : vector<1x8x128xf32> to vector<8x128xf32>
    %37 = vector.shape_cast %34 : vector<8x128xf32> to vector<1x8x128xf32>
    tpu.vector_store %arg6[%c1_25, %c0_26, %c0_27], %37 {strides = array<i32>} : memref<8x8x128xf32, #tpu.memory_space<vmem>>, vector<1x8x128xf32>,
    %cst_28 = arith.constant dense<0.000000e+00> : vector<8x128xf32>
    %38 = tpu.matmul %34, %5, %cst_28 {dimension_numbers = #tpu.dot_dimension_numbers<[1], [0], [0], [1], [0, 0, 1, 1], [], []>} : vector<8x128xf32>, vector<128x128xf32>, vector<8x128xf32> -> vector<8x128xf32>
    %cst_29 = arith.constant 0.899999976 : f32
    %39 = vector.broadcast %cst_29 : f32 to vector<8x128xf32>
    %40 = arith.mulf %39, %28 : vector<8x128xf32>
    %41 = arith.addf %40, %38 : vector<8x128xf32>
    %c2 = arith.constant 2 : index
    %c0_30 = arith.constant 0 : index
    %c0_31 = arith.constant 0 : index
    %42 = vector.load %arg2[%c2, %c0_30, %c0_31] : memref<8x8x128xf32, #tpu.memory_space<vmem>>, vector<1x8x128xf32>
    %43 = vector.shape_cast %42 : vector<1x8x128xf32> to vector<8x128xf32>
    %44 = arith.addf %41, %43 : vector<8x128xf32>
    %45 = math.tanh %44 : vector<8x128xf32>
    %cst_32 = arith.constant 0.000000e+00 : f32
    %46 = vector.broadcast %cst_32 : f32 to vector<8x128xf32>
    %47 = arith.maximumf %45, %46 : vector<8x128xf32>
    %c2_33 = arith.constant 2 : index
    %c0_34 = arith.constant 0 : index
    %c0_35 = arith.constant 0 : index
    %48 = vector.load %arg3[%c2_33, %c0_34, %c0_35] : memref<8x8x128xf32, #tpu.memory_space<vmem>>, vector<1x8x128xf32>
    %49 = vector.shape_cast %48 : vector<1x8x128xf32> to vector<8x128xf32>
    %50 = arith.addf %47, %49 : vector<8x128xf32>
    %c2_36 = arith.constant 2 : index
    %c0_37 = arith.constant 0 : index
    %c0_38 = arith.constant 0 : index
    %51 = vector.load %arg6[%c2_36, %c0_37, %c0_38] : memref<8x8x128xf32, #tpu.memory_space<vmem>>, vector<1x8x128xf32>
    %52 = vector.shape_cast %51 : vector<1x8x128xf32> to vector<8x128xf32>
    %53 = vector.shape_cast %50 : vector<8x128xf32> to vector<1x8x128xf32>
    tpu.vector_store %arg6[%c2_36, %c0_37, %c0_38], %53 {strides = array<i32>} : memref<8x8x128xf32, #tpu.memory_space<vmem>>, vector<1x8x128xf32>,
    %cst_39 = arith.constant dense<0.000000e+00> : vector<8x128xf32>
    %54 = tpu.matmul %50, %5, %cst_39 {dimension_numbers = #tpu.dot_dimension_numbers<[1], [0], [0], [1], [0, 0, 1, 1], [], []>} : vector<8x128xf32>, vector<128x128xf32>, vector<8x128xf32> -> vector<8x128xf32>
    %cst_40 = arith.constant 0.899999976 : f32
    %55 = vector.broadcast %cst_40 : f32 to vector<8x128xf32>
    %56 = arith.mulf %55, %44 : vector<8x128xf32>
    %57 = arith.addf %56, %54 : vector<8x128xf32>
    %c3 = arith.constant 3 : index
    %c0_41 = arith.constant 0 : index
    %c0_42 = arith.constant 0 : index
    %58 = vector.load %arg2[%c3, %c0_41, %c0_42] : memref<8x8x128xf32, #tpu.memory_space<vmem>>, vector<1x8x128xf32>
    %59 = vector.shape_cast %58 : vector<1x8x128xf32> to vector<8x128xf32>
    %60 = arith.addf %57, %59 : vector<8x128xf32>
    %61 = math.tanh %60 : vector<8x128xf32>
    %cst_43 = arith.constant 0.000000e+00 : f32
    %62 = vector.broadcast %cst_43 : f32 to vector<8x128xf32>
    %63 = arith.maximumf %61, %62 : vector<8x128xf32>
    %c3_44 = arith.constant 3 : index
    %c0_45 = arith.constant 0 : index
    %c0_46 = arith.constant 0 : index
    %64 = vector.load %arg3[%c3_44, %c0_45, %c0_46] : memref<8x8x128xf32, #tpu.memory_space<vmem>>, vector<1x8x128xf32>
    %65 = vector.shape_cast %64 : vector<1x8x128xf32> to vector<8x128xf32>
    %66 = arith.addf %63, %65 : vector<8x128xf32>
    %c3_47 = arith.constant 3 : index
    %c0_48 = arith.constant 0 : index
    %c0_49 = arith.constant 0 : index
    %67 = vector.load %arg6[%c3_47, %c0_48, %c0_49] : memref<8x8x128xf32, #tpu.memory_space<vmem>>, vector<1x8x128xf32>
    %68 = vector.shape_cast %67 : vector<1x8x128xf32> to vector<8x128xf32>
    %69 = vector.shape_cast %66 : vector<8x128xf32> to vector<1x8x128xf32>
    tpu.vector_store %arg6[%c3_47, %c0_48, %c0_49], %69 {strides = array<i32>} : memref<8x8x128xf32, #tpu.memory_space<vmem>>, vector<1x8x128xf32>,
    %cst_50 = arith.constant dense<0.000000e+00> : vector<8x128xf32>
    %70 = tpu.matmul %66, %5, %cst_50 {dimension_numbers = #tpu.dot_dimension_numbers<[1], [0], [0], [1], [0, 0, 1, 1], [], []>} : vector<8x128xf32>, vector<128x128xf32>, vector<8x128xf32> -> vector<8x128xf32>
    %cst_51 = arith.constant 0.899999976 : f32
    %71 = vector.broadcast %cst_51 : f32 to vector<8x128xf32>
    %72 = arith.mulf %71, %60 : vector<8x128xf32>
    %73 = arith.addf %72, %70 : vector<8x128xf32>
    %c4 = arith.constant 4 : index
    %c0_52 = arith.constant 0 : index
    %c0_53 = arith.constant 0 : index
    %74 = vector.load %arg2[%c4, %c0_52, %c0_53] : memref<8x8x128xf32, #tpu.memory_space<vmem>>, vector<1x8x128xf32>
    %75 = vector.shape_cast %74 : vector<1x8x128xf32> to vector<8x128xf32>
    %76 = arith.addf %73, %75 : vector<8x128xf32>
    %77 = math.tanh %76 : vector<8x128xf32>
    %cst_54 = arith.constant 0.000000e+00 : f32
    %78 = vector.broadcast %cst_54 : f32 to vector<8x128xf32>
    %79 = arith.maximumf %77, %78 : vector<8x128xf32>
    %c4_55 = arith.constant 4 : index
    %c0_56 = arith.constant 0 : index
    %c0_57 = arith.constant 0 : index
    %80 = vector.load %arg3[%c4_55, %c0_56, %c0_57] : memref<8x8x128xf32, #tpu.memory_space<vmem>>, vector<1x8x128xf32>
    %81 = vector.shape_cast %80 : vector<1x8x128xf32> to vector<8x128xf32>
    %82 = arith.addf %79, %81 : vector<8x128xf32>
    %c4_58 = arith.constant 4 : index
    %c0_59 = arith.constant 0 : index
    %c0_60 = arith.constant 0 : index
    %83 = vector.load %arg6[%c4_58, %c0_59, %c0_60] : memref<8x8x128xf32, #tpu.memory_space<vmem>>, vector<1x8x128xf32>
    %84 = vector.shape_cast %83 : vector<1x8x128xf32> to vector<8x128xf32>
    %85 = vector.shape_cast %82 : vector<8x128xf32> to vector<1x8x128xf32>
    tpu.vector_store %arg6[%c4_58, %c0_59, %c0_60], %85 {strides = array<i32>} : memref<8x8x128xf32, #tpu.memory_space<vmem>>, vector<1x8x128xf32>,
    %cst_61 = arith.constant dense<0.000000e+00> : vector<8x128xf32>
    %86 = tpu.matmul %82, %5, %cst_61 {dimension_numbers = #tpu.dot_dimension_numbers<[1], [0], [0], [1], [0, 0, 1, 1], [], []>} : vector<8x128xf32>, vector<128x128xf32>, vector<8x128xf32> -> vector<8x128xf32>
    %cst_62 = arith.constant 0.899999976 : f32
    %87 = vector.broadcast %cst_62 : f32 to vector<8x128xf32>
    %88 = arith.mulf %87, %76 : vector<8x128xf32>
    %89 = arith.addf %88, %86 : vector<8x128xf32>
    %c5 = arith.constant 5 : index
    %c0_63 = arith.constant 0 : index
    %c0_64 = arith.constant 0 : index
    %90 = vector.load %arg2[%c5, %c0_63, %c0_64] : memref<8x8x128xf32, #tpu.memory_space<vmem>>, vector<1x8x128xf32>
    %91 = vector.shape_cast %90 : vector<1x8x128xf32> to vector<8x128xf32>
    %92 = arith.addf %89, %91 : vector<8x128xf32>
    %93 = math.tanh %92 : vector<8x128xf32>
    %cst_65 = arith.constant 0.000000e+00 : f32
    %94 = vector.broadcast %cst_65 : f32 to vector<8x128xf32>
    %95 = arith.maximumf %93, %94 : vector<8x128xf32>
    %c5_66 = arith.constant 5 : index
    %c0_67 = arith.constant 0 : index
    %c0_68 = arith.constant 0 : index
    %96 = vector.load %arg3[%c5_66, %c0_67, %c0_68] : memref<8x8x128xf32, #tpu.memory_space<vmem>>, vector<1x8x128xf32>
    %97 = vector.shape_cast %96 : vector<1x8x128xf32> to vector<8x128xf32>
    %98 = arith.addf %95, %97 : vector<8x128xf32>
    %c5_69 = arith.constant 5 : index
    %c0_70 = arith.constant 0 : index
    %c0_71 = arith.constant 0 : index
    %99 = vector.load %arg6[%c5_69, %c0_70, %c0_71] : memref<8x8x128xf32, #tpu.memory_space<vmem>>, vector<1x8x128xf32>
    %100 = vector.shape_cast %99 : vector<1x8x128xf32> to vector<8x128xf32>
    %101 = vector.shape_cast %98 : vector<8x128xf32> to vector<1x8x128xf32>
    tpu.vector_store %arg6[%c5_69, %c0_70, %c0_71], %101 {strides = array<i32>} : memref<8x8x128xf32, #tpu.memory_space<vmem>>, vector<1x8x128xf32>,
    %cst_72 = arith.constant dense<0.000000e+00> : vector<8x128xf32>
    %102 = tpu.matmul %98, %5, %cst_72 {dimension_numbers = #tpu.dot_dimension_numbers<[1], [0], [0], [1], [0, 0, 1, 1], [], []>} : vector<8x128xf32>, vector<128x128xf32>, vector<8x128xf32> -> vector<8x128xf32>
    %cst_73 = arith.constant 0.899999976 : f32
    %103 = vector.broadcast %cst_73 : f32 to vector<8x128xf32>
    %104 = arith.mulf %103, %92 : vector<8x128xf32>
    %105 = arith.addf %104, %102 : vector<8x128xf32>
    %c6 = arith.constant 6 : index
    %c0_74 = arith.constant 0 : index
    %c0_75 = arith.constant 0 : index
    %106 = vector.load %arg2[%c6, %c0_74, %c0_75] : memref<8x8x128xf32, #tpu.memory_space<vmem>>, vector<1x8x128xf32>
    %107 = vector.shape_cast %106 : vector<1x8x128xf32> to vector<8x128xf32>
    %108 = arith.addf %105, %107 : vector<8x128xf32>
    %109 = math.tanh %108 : vector<8x128xf32>
    %cst_76 = arith.constant 0.000000e+00 : f32
    %110 = vector.broadcast %cst_76 : f32 to vector<8x128xf32>
    %111 = arith.maximumf %109, %110 : vector<8x128xf32>
    %c6_77 = arith.constant 6 : index
    %c0_78 = arith.constant 0 : index
    %c0_79 = arith.constant 0 : index
    %112 = vector.load %arg3[%c6_77, %c0_78, %c0_79] : memref<8x8x128xf32, #tpu.memory_space<vmem>>, vector<1x8x128xf32>
    %113 = vector.shape_cast %112 : vector<1x8x128xf32> to vector<8x128xf32>
    %114 = arith.addf %111, %113 : vector<8x128xf32>
    %c6_80 = arith.constant 6 : index
    %c0_81 = arith.constant 0 : index
    %c0_82 = arith.constant 0 : index
    %115 = vector.load %arg6[%c6_80, %c0_81, %c0_82] : memref<8x8x128xf32, #tpu.memory_space<vmem>>, vector<1x8x128xf32>
    %116 = vector.shape_cast %115 : vector<1x8x128xf32> to vector<8x128xf32>
    %117 = vector.shape_cast %114 : vector<8x128xf32> to vector<1x8x128xf32>
    tpu.vector_store %arg6[%c6_80, %c0_81, %c0_82], %117 {strides = array<i32>} : memref<8x8x128xf32, #tpu.memory_space<vmem>>, vector<1x8x128xf32>,
    %cst_83 = arith.constant dense<0.000000e+00> : vector<8x128xf32>
    %118 = tpu.matmul %114, %5, %cst_83 {dimension_numbers = #tpu.dot_dimension_numbers<[1], [0], [0], [1], [0, 0, 1, 1], [], []>} : vector<8x128xf32>, vector<128x128xf32>, vector<8x128xf32> -> vector<8x128xf32>
    %cst_84 = arith.constant 0.899999976 : f32
    %119 = vector.broadcast %cst_84 : f32 to vector<8x128xf32>
    %120 = arith.mulf %119, %108 : vector<8x128xf32>
    %121 = arith.addf %120, %118 : vector<8x128xf32>
    %c7 = arith.constant 7 : index
    %c0_85 = arith.constant 0 : index
    %c0_86 = arith.constant 0 : index
    %122 = vector.load %arg2[%c7, %c0_85, %c0_86] : memref<8x8x128xf32, #tpu.memory_space<vmem>>, vector<1x8x128xf32>
    %123 = vector.shape_cast %122 : vector<1x8x128xf32> to vector<8x128xf32>
    %124 = arith.addf %121, %123 : vector<8x128xf32>
    %125 = math.tanh %124 : vector<8x128xf32>
    %cst_87 = arith.constant 0.000000e+00 : f32
    %126 = vector.broadcast %cst_87 : f32 to vector<8x128xf32>
    %127 = arith.maximumf %125, %126 : vector<8x128xf32>
    %c7_88 = arith.constant 7 : index
    %c0_89 = arith.constant 0 : index
    %c0_90 = arith.constant 0 : index
    %128 = vector.load %arg3[%c7_88, %c0_89, %c0_90] : memref<8x8x128xf32, #tpu.memory_space<vmem>>, vector<1x8x128xf32>
    %129 = vector.shape_cast %128 : vector<1x8x128xf32> to vector<8x128xf32>
    %130 = arith.addf %127, %129 : vector<8x128xf32>
    %c7_91 = arith.constant 7 : index
    %c0_92 = arith.constant 0 : index
    %c0_93 = arith.constant 0 : index
    %131 = vector.load %arg6[%c7_91, %c0_92, %c0_93] : memref<8x8x128xf32, #tpu.memory_space<vmem>>, vector<1x8x128xf32>
    %132 = vector.shape_cast %131 : vector<1x8x128xf32> to vector<8x128xf32>
    %133 = vector.shape_cast %130 : vector<8x128xf32> to vector<1x8x128xf32>
    tpu.vector_store %arg6[%c7_91, %c0_92, %c0_93], %133 {strides = array<i32>} : memref<8x8x128xf32, #tpu.memory_space<vmem>>, vector<1x8x128xf32>,
    %c0_94 = arith.constant 0 : index
    %c0_95 = arith.constant 0 : index
    %134 = vector.load %arg7[%c0_94, %c0_95] : memref<8x128xf32, #tpu.memory_space<vmem>>, vector<8x128xf32>
    tpu.vector_store %arg7[%c0_94, %c0_95], %124 {strides = array<i32>} : memref<8x128xf32, #tpu.memory_space<vmem>>, vector<8x128xf32>,
    %c0_96 = arith.constant 0 : index
    %c0_97 = arith.constant 0 : index
    %135 = vector.load %arg8[%c0_96, %c0_97] : memref<8x128xf32, #tpu.memory_space<vmem>>, vector<8x128xf32>
    tpu.vector_store %arg8[%c0_96, %c0_97], %130 {strides = array<i32>} : memref<8x128xf32, #tpu.memory_space<vmem>>, vector<8x128xf32>,
    return
  }
  func.func @transform_0(%arg0: i32, %arg1: i32) -> (i32, i32, i32) {
    %c0_i32 = arith.constant 0 : i32
    %c0_i32_0 = arith.constant 0 : i32
    return %arg1, %arg0, %c0_i32 : i32, i32, i32
  }
  func.func @transform_1(%arg0: i32, %arg1: i32) -> (i32, i32, i32) {
    %c0_i32 = arith.constant 0 : i32
    %c0_i32_0 = arith.constant 0 : i32
    return %arg1, %arg0, %c0_i32 : i32, i32, i32
  }
  func.func @transform_2(%arg0: i32, %arg1: i32) -> (i32, i32) {
    %c0_i32 = arith.constant 0 : i32
    %c0_i32_0 = arith.constant 0 : i32
    %c0_i32_1 = arith.constant 0 : i32
    return %c0_i32, %c0_i32_0 : i32, i32
  }
  func.func @transform_3(%arg0: i32, %arg1: i32) -> (i32, i32) {
    %c0_i32 = arith.constant 0 : i32
    %c0_i32_0 = arith.constant 0 : i32
    %c0_i32_1 = arith.constant 0 : i32
    return %c0_i32, %c0_i32_0 : i32, i32
  }
  func.func @transform_4(%arg0: i32, %arg1: i32) -> (i32, i32, i32) {
    %c0_i32 = arith.constant 0 : i32
    %c0_i32_0 = arith.constant 0 : i32
    return %arg1, %arg0, %c0_i32 : i32, i32, i32
  }
}

</mosaic_0001>

<bundles_post_ra>
// kernel: tpu_custom_call.1
= control target key start
LH: loop header
LB: loop body
LE: loop exit
PB: predicated region body
PF: predicated region fallthrough
CT: control target
= control target key end

     0   :  { %9 = vsyncpa [#allocation5], 0  ;;  %s1662_s0 = inlined_call_operand.hbm [shape: f32[8,8,128], index: 0, kind: input, shape index: {}]   ;;  %s1663_s1 = inlined_call_operand.hbm [shape: f32[8,8,128], index: 1, kind: input, shape index: {}]   ;;  %s1664_s2 = inlined_call_operand.vmem [shape: f32[1,128], index: 2, kind: input, shape index: {}]   ;;  %s1665_s3 = inlined_call_operand.hbm [shape: f32[128,128], index: 3, kind: input, shape index: {}]   ;;  %s1666_s4 = inlined_call_operand.hbm [shape: f32[8,8,128], index: 4, kind: output, shape index: {}]  }
   0x1   :  { %10 = vsyncpa [#allocation8], 0 }
   0x2   :  { %11 = vsyncpa [#allocation6], 0  ;;  %s1294_s15 = smov [#allocation7]   ;;  %s1295_s17 = smov [#allocation4]  }
   0x3   :  { %s29_s16 = sshll.u32 %s1294_s15, 4  ;;  %s17_s18 = sshll.u32 %s1295_s17, 4  ;;  %s30_s16 = int_to_ptr.vmem [resolvable:$true] %s29_s16  ;;  %s18_s18 = int_to_ptr.vmem [resolvable:$true] %s17_s18 }
   0x4   :  { %s1216_s19 = scalar_lea.vmem %s30_s16, 1024  ;;  %p1221_p1 = scmp.lt.s32.totalorder %s30_s16, %s30_s16 }
   0x5   :  { %p1217_p0 = scmp.ne.s32.totalorder %s30_s16, %s1216_s19  ;;  %p1222_p2 = scmp.lt.s32.totalorder %s1216_s19, %s1216_s19 }
   0x7   :  { %p1223_p3 = por %p1222_p2, %p1221_p1 }
   0x9   :  { %p1224_p4 = pnand %p1223_p3, %p1217_p0 }
   0xb   :  { %1227 = shalt.err (!%p1224_p4)
}
   0xc   :  { %s1296_s20 = smov 128   ;;  %s1297_s21 = smov 8  }
   0xd   :  { %35 = dma.hbm_to_vmem [thread:$0]  %s1663_s1, 1024, %s30_s16, [#allocation8], %s1296_s20, %s1296_s20, %s1297_s21  }
   0xe   :  { %s1236_s24 = scalar_lea.vmem %s18_s18, 1024  ;;  %p1241_p6 = scmp.lt.s32.totalorder %s18_s18, %s18_s18 }
   0xf   :  { %p1237_p5 = scmp.ne.s32.totalorder %s18_s18, %s1236_s24  ;;  %p1242_p7 = scmp.lt.s32.totalorder %s1236_s24, %s1236_s24 }
  0x11   :  { %p1243_p8 = por %p1242_p7, %p1241_p6 }
  0x13   :  { %p1244_p9 = pnand %p1243_p8, %p1237_p5 }
  0x15   :  { %1247 = shalt.err (!%p1244_p9)
}
  0x16   :  { %23 = dma.hbm_to_vmem [thread:$0]  %s1662_s0, 1024, %s18_s18, [#allocation5], %s1296_s20, %s1296_s20, %s1297_s21  }
  0x17   :  { %s1298_s27 = smov [#allocation9]  }
  0x18   :  { %s43_s28 = sshll.u32 %s1298_s27, 4  ;;  %s44_s28 = int_to_ptr.vmem [resolvable:$true] %s43_s28 }
  0x19   :  { %s1256_s29 = scalar_lea.vmem %s44_s28, 2048  ;;  %p1261_p11 = scmp.lt.s32.totalorder %s44_s28, %s44_s28 }
  0x1a   :  { %p1257_p10 = scmp.ne.s32.totalorder %s44_s28, %s1256_s29  ;;  %p1262_p12 = scmp.lt.s32.totalorder %s1256_s29, %s1256_s29 }
  0x1c   :  { %p1263_p13 = por %p1262_p12, %p1261_p11 }
  0x1e   :  { %p1264_p0 = pnand %p1263_p13, %p1257_p10 }
  0x20   :  { %1267 = shalt.err (!%p1264_p0)
}
  0x21   :  { %49 = dma.hbm_to_vmem [thread:$0]  %s1665_s3, 2048, %s44_s28, [#allocation8], %s1296_s20, %s1296_s20, %s1297_s21  }
  0x22   :  { %1288 = dma.done.wait [#allocation5], 1024  }
  0x23   :  { %1289 = vsyncadd [#allocation5], 4294966272 }
  0x24   :  { %1290 = dma.done.wait [#allocation8], 3072  }
  0x25   :  { %1291 = vsyncadd [#allocation8], 4294964224  ;;  %v1299_v0 = vmov 0.0   ;;  %vm1300_vm0 = vmmov 0   ;;  %v1351_v1 = vld [vmem:[#allocation9 + $0x78] sm:$0xff]  ;;  %v1353_v2 = vld [vmem:[#allocation9 + $0x70] sm:$0xff] }
  0x26   :  { %902 = vmatprep.subr.mxu0 %v1299_v0  ;;  %934 = vmatprep.mubr.msk.f32.mxu0 %vm1300_vm0, %v1299_v0  ;;  %v1358_v3 = vld [vmem:[#allocation9 + $0x68] sm:$0xff]  ;;  %v1364_v4 = vld [vmem:[#allocation9 + $0x60] sm:$0xff]  ;;  %v1370_v5 = vld [vmem:[#allocation9 + $0x58] sm:$0xff] }
  0x27   :  { %937 = vmatprep.subr.mxu1 %v1299_v0  ;;  %969 = vmatprep.mubr.msk.f32.mxu1 %vm1300_vm0, %v1299_v0  ;;  %v1376_v6 = vld [vmem:[#allocation9 + $0x50] sm:$0xff]  ;;  %v1383_v7 = vld [vmem:[%s1664_s2] ss:$0 sm:$0xff]  ;;  %v1387_v8 = vld [vmem:[#allocation9 + $0x48] sm:$0xff]  ;;  %s1301_s2 = smov [#allocation10]  }
  0x28   :  { %903 = vmatpush3.msra.mxu0 %v1351_v1  ;;  %938 = vmatpush3.msra.mxu1 %v1351_v1  ;;  %v1393_v9 = vld [vmem:[#allocation9 + $0x40] sm:$0xff]  ;;  %1190 = vtanh.f32 %v1383_v7  ;;  %v1400_v10 = vld [vmem:[#allocation9 + $0x38] sm:$0xff]  ;;  %v1406_v11 = vld [vmem:[#allocation9 + $0x30] sm:$0xff]  ;;  %v162_v20 = vmul.f32 0.9, %v1383_v7  ;;  %s752_s5 = sshll.u32 %s1301_s2, 4  ;;  %s753_s5 = int_to_ptr.vmem [resolvable:$true] %s752_s5 }
  0x29   :  { %904 = vmatprep.subr.mxu0 %v1299_v0  ;;  %939 = vmatprep.subr.mxu1 %v1299_v0  ;;  %v1412_v12 = vld [vmem:[#allocation9 + $0x28] sm:$0xff]  ;;  %v1418_v13 = vld [vmem:[#allocation9 + $0x20] sm:$0xff]  ;;  %v1424_v14 = vld [vmem:[#allocation9 + $0x18] sm:$0xff]  ;;  %s1268_s6 = scalar_lea.vmem %s753_s5, 1024  ;;  %p1273_p2 = scmp.lt.s32.totalorder %s753_s5, %s753_s5 }
  0x2a   :  { %905 = vmatpush3.msra.mxu0 %v1353_v2  ;;  %940 = vmatpush3.msra.mxu1 %v1353_v2  ;;  %v1430_v15 = vld [vmem:[#allocation9 + $0x10] sm:$0xff]  ;;  %v1436_v17 = vld [vmem:[#allocation9 + $0x8] sm:$0xff]  ;;  %v1442_v18 = vld [vmem:[#allocation9] sm:$0xff]  ;;  %p1269_p1 = scmp.ne.s32.totalorder %s753_s5, %s1268_s6  ;;  %p1274_p3 = scmp.lt.s32.totalorder %s1268_s6, %s1268_s6 }
  0x2b   :  { %906 = vmatprep.subr.mxu0 %v1299_v0  ;;  %941 = vmatprep.subr.mxu1 %v1299_v0  ;;  %v164_v22 = vld [vmem:[#allocation4] sm:$0xff]  ;;  %v244_v32 = vld [vmem:[#allocation4 + $0x8] sm:$0xff]  ;;  %v326_v42 = vld [vmem:[#allocation4 + $0x10] sm:$0xff] }
  0x2c   :  { %907 = vmatpush3.msra.mxu0 %v1358_v3  ;;  %942 = vmatpush3.msra.mxu1 %v1358_v3  ;;  %v168_v27 = vld [vmem:[#allocation7] sm:$0xff]  ;;  %v249_v37 = vld [vmem:[#allocation7 + $0x8] sm:$0xff]  ;;  %v331_v47 = vld [vmem:[#allocation7 + $0x10] sm:$0xff]  ;;  %p1275_p4 = por %p1274_p3, %p1273_p2 }
  0x2d   :  { %908 = vmatprep.subr.mxu0 %v1299_v0  ;;  %943 = vmatprep.subr.mxu1 %v1299_v0  ;;  %v408_v52 = vld [vmem:[#allocation4 + $0x18] sm:$0xff]  ;;  %v490_v62 = vld [vmem:[#allocation4 + $0x20] sm:$0xff] }
  0x2e   :  { %909 = vmatpush3.msra.mxu0 %v1364_v4  ;;  %944 = vmatpush3.msra.mxu1 %v1364_v4  ;;  %v413_v57 = vld [vmem:[#allocation7 + $0x18] sm:$0xff]  ;;  %p1276_p5 = pnand %p1275_p4, %p1269_p1 }
  0x2f   :  { %910 = vmatprep.subr.mxu0 %v1299_v0  ;;  %945 = vmatprep.subr.mxu1 %v1299_v0 }
  0x30   :  { %911 = vmatpush3.msra.mxu0 %v1370_v5  ;;  %946 = vmatpush3.msra.mxu1 %v1370_v5 }
  0x31   :  { %912 = vmatprep.subr.mxu0 %v1299_v0  ;;  %947 = vmatprep.subr.mxu1 %v1299_v0 }
  0x32   :  { %913 = vmatpush3.msra.mxu0 %v1376_v6  ;;  %948 = vmatpush3.msra.mxu1 %v1376_v6 }
  0x33   :  { %914 = vmatprep.subr.mxu0 %v1299_v0  ;;  %949 = vmatprep.subr.mxu1 %v1299_v0 }
  0x34   :  { %915 = vmatpush3.msra.mxu0 %v1387_v8  ;;  %950 = vmatpush3.msra.mxu1 %v1387_v8 }
  0x35   :  { %916 = vmatprep.subr.mxu0 %v1299_v0  ;;  %951 = vmatprep.subr.mxu1 %v1299_v0  ;;  %v1191_v16 = vpop.eup %1190 }
  0x36   :  { %917 = vmatpush3.msra.mxu0 %v1393_v9  ;;  %952 = vmatpush3.msra.mxu1 %v1393_v9  ;;  %v72_v19 = vmax.f32 %v1191_v16, 0.0 }
  0x37   :  { %918 = vmatprep.subr.mxu0 %v1299_v0  ;;  %953 = vmatprep.subr.mxu1 %v1299_v0 }
  0x38   :  { %919 = vmatpush3.msra.mxu0 %v1400_v10  ;;  %954 = vmatpush3.msra.mxu1 %v1400_v10 }
  0x39   :  { %920 = vmatprep.subr.mxu0 %v1299_v0  ;;  %955 = vmatprep.subr.mxu1 %v1299_v0 }
  0x3a   :  { %921 = vmatpush3.msra.mxu0 %v1406_v11  ;;  %956 = vmatpush3.msra.mxu1 %v1406_v11 }
  0x3b   :  { %922 = vmatprep.subr.mxu0 %v1299_v0  ;;  %957 = vmatprep.subr.mxu1 %v1299_v0 }
  0x3c   :  { %923 = vmatpush3.msra.mxu0 %v1412_v12  ;;  %958 = vmatpush3.msra.mxu1 %v1412_v12 }
  0x3d   :  { %924 = vmatprep.subr.mxu0 %v1299_v0  ;;  %959 = vmatprep.subr.mxu1 %v1299_v0 }
  0x3e   :  { %925 = vmatpush3.msra.mxu0 %v1418_v13  ;;  %960 = vmatpush3.msra.mxu1 %v1418_v13 }
  0x3f   :  { %926 = vmatprep.subr.mxu0 %v1299_v0  ;;  %961 = vmatprep.subr.mxu1 %v1299_v0 }
  0x40   :  { %927 = vmatpush3.msra.mxu0 %v1424_v14  ;;  %962 = vmatpush3.msra.mxu1 %v1424_v14 }
  0x41   :  { %928 = vmatprep.subr.mxu0 %v1299_v0  ;;  %963 = vmatprep.subr.mxu1 %v1299_v0 }
  0x42   :  { %929 = vmatpush3.msra.mxu0 %v1430_v15  ;;  %964 = vmatpush3.msra.mxu1 %v1430_v15 }
  0x43   :  { %930 = vmatprep.subr.mxu0 %v1299_v0  ;;  %965 = vmatprep.subr.mxu1 %v1299_v0 }
  0x44   :  { %931 = vmatpush3.msra.mxu0 %v1436_v17  ;;  %966 = vmatpush3.msra.mxu1 %v1436_v17 }
  0x45   :  { %932 = vmatprep.subr.mxu0 %v1299_v0  ;;  %967 = vmatprep.subr.mxu1 %v1299_v0 }
  0x46   :  { %933 = vmatpush3.msra.mxu0 %v1442_v18  ;;  %968 = vmatpush3.msra.mxu1 %v1442_v18 }
  0x47   :  { %935 = vmatmul.mubr.f32.vlgmr.msra.gmra.mxu0 %v72_v19  ;;  %972 = vmatprep.subr.mxu0 %v1299_v0 }
  0x48   :  { %973 = vmatpush3.msra.mxu0 %v1351_v1  ;;  %1004 = vmatprep.mubr.msk.f32.mxu0 %vm1300_vm0, %v1299_v0 }
  0x49   :  { %974 = vmatprep.subr.mxu0 %v1299_v0  ;;  %1007 = vmatprep.subr.mxu1 %v1299_v0 }
  0x4a   :  { %975 = vmatpush3.msra.mxu0 %v1353_v2 }
  0x4b   :  { %976 = vmatprep.subr.mxu0 %v1299_v0 }
  0x4c   :  { %977 = vmatpush3.msra.mxu0 %v1358_v3 }
  0x4d   :  { %978 = vmatprep.subr.mxu0 %v1299_v0 }
  0x4e   :  { %979 = vmatpush3.msra.mxu0 %v1364_v4 }
  0x4f   :  { %980 = vmatprep.subr.mxu0 %v1299_v0 }
  0x50   :  { %981 = vmatpush3.msra.mxu0 %v1370_v5 }
  0x51   :  { %982 = vmatprep.subr.mxu0 %v1299_v0 }
  0x52   :  { %983 = vmatpush3.msra.mxu0 %v1376_v6 }
  0x53   :  { %984 = vmatprep.subr.mxu0 %v1299_v0 }
  0x54   :  { %985 = vmatpush3.msra.mxu0 %v1387_v8 }
  0x55   :  { %986 = vmatprep.subr.mxu0 %v1299_v0 }
  0x56   :  { %987 = vmatpush3.msra.mxu0 %v1393_v9 }
  0x57   :  { %988 = vmatprep.subr.mxu0 %v1299_v0 }
  0x58   :  { %989 = vmatpush3.msra.mxu0 %v1400_v10 }
  0x59   :  { %990 = vmatprep.subr.mxu0 %v1299_v0 }
  0x5a   :  { %991 = vmatpush3.msra.mxu0 %v1406_v11 }
  0x5b   :  { %992 = vmatprep.subr.mxu0 %v1299_v0 }
  0x5c   :  { %993 = vmatpush3.msra.mxu0 %v1412_v12 }
  0x5d   :  { %994 = vmatprep.subr.mxu0 %v1299_v0 }
  0x5e   :  { %995 = vmatpush3.msra.mxu0 %v1418_v13 }
  0x5f   :  { %996 = vmatprep.subr.mxu0 %v1299_v0 }
  0x60   :  { %997 = vmatpush3.msra.mxu0 %v1424_v14 }
  0x61   :  { %998 = vmatprep.subr.mxu0 %v1299_v0 }
  0x62   :  { %999 = vmatpush3.msra.mxu0 %v1430_v15 }
  0x63   :  { %1000 = vmatprep.subr.mxu0 %v1299_v0 }
  0x64   :  { %1001 = vmatpush3.msra.mxu0 %v1436_v17 }
  0x65   :  { %1002 = vmatprep.subr.mxu0 %v1299_v0 }
  0x66   :  { %1003 = vmatpush3.msra.mxu0 %v1442_v18 }
  0x67   :  { %1042 = vmatprep.subr.mxu0 %v1299_v0 }
 0x107   :  { %v158_v21 = vpop.f32.mrf.mxu0 }
 0x108   :  { %v163_v23 = vadd.f32 %v162_v20, %v158_v21  ;;  %v495_v20 = vld [vmem:[#allocation7 + $0x20] sm:$0xff] }
 0x109   :  { %v936_v24 = vpop.f32.mrf.mxu0 }
 0x10a   :  { %v165_v25 = vadd.f32 %v164_v22, %v163_v23  ;;  %v659_v23 = vld [vmem:[#allocation7 + $0x30] sm:$0xff] }
 0x10c   :  { %1192 = vtanh.f32 %v165_v25  ;;  %v241_v30 = vmul.f32 0.9, %v165_v25 }
 0x119   :  { %v1193_v26 = vpop.eup %1192 }
 0x11a   :  { %v167_v28 = vmax.f32 %v1193_v26, 0.0 }
 0x11c   :  { %v169_v29 = vadd.f32 %v168_v27, %v167_v28  ;;  %v736_v28 = vld [vmem:[#allocation4 + $0x38] sm:$0xff] }
 0x11e   :  { %170 = vst [vmem:[#allocation10] sm:$0xff] %v169_v29  ;;  %970 = vmatmul.mubr.f32.vlgmr.msra.gmra.mxu1 %v169_v29 }
 0x11f   :  { %1008 = vmatpush3.msra.mxu1 %v1351_v1  ;;  %1039 = vmatprep.mubr.msk.f32.mxu1 %vm1300_vm0, %v1299_v0 }
 0x120   :  { %1009 = vmatprep.subr.mxu1 %v1299_v0 }
 0x121   :  { %1010 = vmatpush3.msra.mxu1 %v1353_v2 }
 0x122   :  { %1011 = vmatprep.subr.mxu1 %v1299_v0 }
 0x123   :  { %1012 = vmatpush3.msra.mxu1 %v1358_v3 }
 0x124   :  { %1013 = vmatprep.subr.mxu1 %v1299_v0 }
 0x125   :  { %1014 = vmatpush3.msra.mxu1 %v1364_v4 }
 0x126   :  { %1015 = vmatprep.subr.mxu1 %v1299_v0 }
 0x127   :  { %1016 = vmatpush3.msra.mxu1 %v1370_v5 }
 0x128   :  { %1017 = vmatprep.subr.mxu1 %v1299_v0 }
 0x129   :  { %1018 = vmatpush3.msra.mxu1 %v1376_v6 }
 0x12a   :  { %1019 = vmatprep.subr.mxu1 %v1299_v0 }
 0x12b   :  { %1020 = vmatpush3.msra.mxu1 %v1387_v8 }
 0x12c   :  { %1021 = vmatprep.subr.mxu1 %v1299_v0 }
 0x12d   :  { %1022 = vmatpush3.msra.mxu1 %v1393_v9 }
 0x12e   :  { %1023 = vmatprep.subr.mxu1 %v1299_v0 }
 0x12f   :  { %1024 = vmatpush3.msra.mxu1 %v1400_v10 }
 0x130   :  { %1025 = vmatprep.subr.mxu1 %v1299_v0 }
 0x131   :  { %1026 = vmatpush3.msra.mxu1 %v1406_v11 }
 0x132   :  { %1027 = vmatprep.subr.mxu1 %v1299_v0 }
 0x133   :  { %1028 = vmatpush3.msra.mxu1 %v1412_v12 }
 0x134   :  { %1029 = vmatprep.subr.mxu1 %v1299_v0 }
 0x135   :  { %1030 = vmatpush3.msra.mxu1 %v1418_v13 }
 0x136   :  { %1031 = vmatprep.subr.mxu1 %v1299_v0 }
 0x137   :  { %1032 = vmatpush3.msra.mxu1 %v1424_v14 }
 0x138   :  { %1033 = vmatprep.subr.mxu1 %v1299_v0 }
 0x139   :  { %1034 = vmatpush3.msra.mxu1 %v1430_v15 }
 0x13a   :  { %1035 = vmatprep.subr.mxu1 %v1299_v0 }
 0x13b   :  { %1036 = vmatpush3.msra.mxu1 %v1436_v17 }
 0x13c   :  { %1037 = vmatprep.subr.mxu1 %v1299_v0 }
 0x13d   :  { %1038 = vmatpush3.msra.mxu1 %v1442_v18 }
 0x13e   :  { %1077 = vmatprep.subr.mxu1 %v1299_v0 }
 0x1de   :  { %v237_v31 = vpop.f32.mrf.mxu1 }
 0x1df   :  { %v242_v33 = vadd.f32 %v241_v30, %v237_v31 }
 0x1e0   :  { %v971_v34 = vpop.f32.mrf.mxu1 }
 0x1e1   :  { %v245_v35 = vadd.f32 %v244_v32, %v242_v33  ;;  %v741_v33 = vld [vmem:[#allocation7 + $0x38] sm:$0xff] }
 0x1e3   :  { %1194 = vtanh.f32 %v245_v35  ;;  %v323_v40 = vmul.f32 0.9, %v245_v35 }
 0x1f0   :  { %v1195_v36 = vpop.eup %1194 }
 0x1f1   :  { %v247_v38 = vmax.f32 %v1195_v36, 0.0 }
 0x1f3   :  { %v250_v39 = vadd.f32 %v249_v37, %v247_v38 }
 0x1f5   :  { %252 = vst [vmem:[#allocation10 + $0x8] sm:$0xff] %v250_v39  ;;  %1005 = vmatmul.mubr.f32.vlgmr.msra.gmra.mxu0 %v250_v39 }
 0x1f6   :  { %1043 = vmatpush3.msra.mxu0 %v1351_v1  ;;  %1074 = vmatprep.mubr.msk.f32.mxu0 %vm1300_vm0, %v1299_v0 }
 0x1f7   :  { %1044 = vmatprep.subr.mxu0 %v1299_v0 }
 0x1f8   :  { %1045 = vmatpush3.msra.mxu0 %v1353_v2 }
 0x1f9   :  { %1046 = vmatprep.subr.mxu0 %v1299_v0 }
 0x1fa   :  { %1047 = vmatpush3.msra.mxu0 %v1358_v3 }
 0x1fb   :  { %1048 = vmatprep.subr.mxu0 %v1299_v0 }
 0x1fc   :  { %1049 = vmatpush3.msra.mxu0 %v1364_v4 }
 0x1fd   :  { %1050 = vmatprep.subr.mxu0 %v1299_v0 }
 0x1fe   :  { %1051 = vmatpush3.msra.mxu0 %v1370_v5 }
 0x1ff   :  { %1052 = vmatprep.subr.mxu0 %v1299_v0 }
 0x200   :  { %1053 = vmatpush3.msra.mxu0 %v1376_v6 }
 0x201   :  { %1054 = vmatprep.subr.mxu0 %v1299_v0 }
 0x202   :  { %1055 = vmatpush3.msra.mxu0 %v1387_v8 }
 0x203   :  { %1056 = vmatprep.subr.mxu0 %v1299_v0 }
 0x204   :  { %1057 = vmatpush3.msra.mxu0 %v1393_v9 }
 0x205   :  { %1058 = vmatprep.subr.mxu0 %v1299_v0 }
 0x206   :  { %1059 = vmatpush3.msra.mxu0 %v1400_v10 }
 0x207   :  { %1060 = vmatprep.subr.mxu0 %v1299_v0 }
 0x208   :  { %1061 = vmatpush3.msra.mxu0 %v1406_v11 }
 0x209   :  { %1062 = vmatprep.subr.mxu0 %v1299_v0 }
 0x20a   :  { %1063 = vmatpush3.msra.mxu0 %v1412_v12 }
 0x20b   :  { %1064 = vmatprep.subr.mxu0 %v1299_v0 }
 0x20c   :  { %1065 = vmatpush3.msra.mxu0 %v1418_v13 }
 0x20d   :  { %1066 = vmatprep.subr.mxu0 %v1299_v0 }
 0x20e   :  { %1067 = vmatpush3.msra.mxu0 %v1424_v14 }
 0x20f   :  { %1068 = vmatprep.subr.mxu0 %v1299_v0 }
 0x210   :  { %1069 = vmatpush3.msra.mxu0 %v1430_v15 }
 0x211   :  { %1070 = vmatprep.subr.mxu0 %v1299_v0 }
 0x212   :  { %1071 = vmatpush3.msra.mxu0 %v1436_v17 }
 0x213   :  { %1072 = vmatprep.subr.mxu0 %v1299_v0 }
 0x214   :  { %1073 = vmatpush3.msra.mxu0 %v1442_v18 }
 0x215   :  { %1112 = vmatprep.subr.mxu0 %v1299_v0 }
 0x2b5   :  { %v319_v41 = vpop.f32.mrf.mxu0 }
 0x2b6   :  { %v324_v43 = vadd.f32 %v323_v40, %v319_v41 }
 0x2b7   :  { %v1006_v44 = vpop.f32.mrf.mxu0 }
 0x2b8   :  { %v327_v45 = vadd.f32 %v326_v42, %v324_v43 }
 0x2ba   :  { %1196 = vtanh.f32 %v327_v45  ;;  %v405_v50 = vmul.f32 0.9, %v327_v45 }
 0x2c7   :  { %v1197_v46 = vpop.eup %1196 }
 0x2c8   :  { %v329_v48 = vmax.f32 %v1197_v46, 0.0 }
 0x2ca   :  { %v332_v49 = vadd.f32 %v331_v47, %v329_v48 }
 0x2cc   :  { %334 = vst [vmem:[#allocation10 + $0x10] sm:$0xff] %v332_v49  ;;  %1040 = vmatmul.mubr.f32.vlgmr.msra.gmra.mxu1 %v332_v49 }
 0x2cd   :  { %1078 = vmatpush3.msra.mxu1 %v1351_v1  ;;  %1109 = vmatprep.mubr.msk.f32.mxu1 %vm1300_vm0, %v1299_v0 }
 0x2ce   :  { %1079 = vmatprep.subr.mxu1 %v1299_v0 }
 0x2cf   :  { %1080 = vmatpush3.msra.mxu1 %v1353_v2 }
 0x2d0   :  { %1081 = vmatprep.subr.mxu1 %v1299_v0 }
 0x2d1   :  { %1082 = vmatpush3.msra.mxu1 %v1358_v3 }
 0x2d2   :  { %1083 = vmatprep.subr.mxu1 %v1299_v0 }
 0x2d3   :  { %1084 = vmatpush3.msra.mxu1 %v1364_v4 }
 0x2d4   :  { %1085 = vmatprep.subr.mxu1 %v1299_v0 }
 0x2d5   :  { %1086 = vmatpush3.msra.mxu1 %v1370_v5 }
 0x2d6   :  { %1087 = vmatprep.subr.mxu1 %v1299_v0 }
 0x2d7   :  { %1088 = vmatpush3.msra.mxu1 %v1376_v6 }
 0x2d8   :  { %1089 = vmatprep.subr.mxu1 %v1299_v0 }
 0x2d9   :  { %1090 = vmatpush3.msra.mxu1 %v1387_v8 }
 0x2da   :  { %1091 = vmatprep.subr.mxu1 %v1299_v0 }
 0x2db   :  { %1092 = vmatpush3.msra.mxu1 %v1393_v9 }
 0x2dc   :  { %1093 = vmatprep.subr.mxu1 %v1299_v0 }
 0x2dd   :  { %1094 = vmatpush3.msra.mxu1 %v1400_v10 }
 0x2de   :  { %1095 = vmatprep.subr.mxu1 %v1299_v0 }
 0x2df   :  { %1096 = vmatpush3.msra.mxu1 %v1406_v11 }
 0x2e0   :  { %1097 = vmatprep.subr.mxu1 %v1299_v0 }
 0x2e1   :  { %1098 = vmatpush3.msra.mxu1 %v1412_v12 }
 0x2e2   :  { %1099 = vmatprep.subr.mxu1 %v1299_v0 }
 0x2e3   :  { %1100 = vmatpush3.msra.mxu1 %v1418_v13 }
 0x2e4   :  { %1101 = vmatprep.subr.mxu1 %v1299_v0 }
 0x2e5   :  { %1102 = vmatpush3.msra.mxu1 %v1424_v14 }
 0x2e6   :  { %1103 = vmatprep.subr.mxu1 %v1299_v0 }
 0x2e7   :  { %1104 = vmatpush3.msra.mxu1 %v1430_v15 }
 0x2e8   :  { %1105 = vmatprep.subr.mxu1 %v1299_v0 }
 0x2e9   :  { %1106 = vmatpush3.msra.mxu1 %v1436_v17 }
 0x2ea   :  { %1107 = vmatprep.subr.mxu1 %v1299_v0 }
 0x2eb   :  { %1108 = vmatpush3.msra.mxu1 %v1442_v18 }
 0x2ec   :  { %1147 = vmatprep.subr.mxu1 %v1299_v0 }
 0x38c   :  { %v401_v51 = vpop.f32.mrf.mxu1 }
 0x38d   :  { %v406_v53 = vadd.f32 %v405_v50, %v401_v51 }
 0x38e   :  { %v1041_v54 = vpop.f32.mrf.mxu1 }
 0x38f   :  { %v409_v55 = vadd.f32 %v408_v52, %v406_v53 }
 0x391   :  { %1198 = vtanh.f32 %v409_v55  ;;  %v487_v60 = vmul.f32 0.9, %v409_v55 }
 0x39e   :  { %v1199_v56 = vpop.eup %1198 }
 0x39f   :  { %v411_v58 = vmax.f32 %v1199_v56, 0.0 }
 0x3a1   :  { %v414_v59 = vadd.f32 %v413_v57, %v411_v58 }
 0x3a3   :  { %416 = vst [vmem:[#allocation10 + $0x18] sm:$0xff] %v414_v59  ;;  %1075 = vmatmul.mubr.f32.vlgmr.msra.gmra.mxu0 %v414_v59 }
 0x3a4   :  { %1113 = vmatpush3.msra.mxu0 %v1351_v1  ;;  %1144 = vmatprep.mubr.msk.f32.mxu0 %vm1300_vm0, %v1299_v0 }
 0x3a5   :  { %1114 = vmatprep.subr.mxu0 %v1299_v0 }
 0x3a6   :  { %1115 = vmatpush3.msra.mxu0 %v1353_v2 }
 0x3a7   :  { %1116 = vmatprep.subr.mxu0 %v1299_v0 }
 0x3a8   :  { %1117 = vmatpush3.msra.mxu0 %v1358_v3 }
 0x3a9   :  { %1118 = vmatprep.subr.mxu0 %v1299_v0 }
 0x3aa   :  { %1119 = vmatpush3.msra.mxu0 %v1364_v4 }
 0x3ab   :  { %1120 = vmatprep.subr.mxu0 %v1299_v0 }
 0x3ac   :  { %1121 = vmatpush3.msra.mxu0 %v1370_v5 }
 0x3ad   :  { %1122 = vmatprep.subr.mxu0 %v1299_v0 }
 0x3ae   :  { %1123 = vmatpush3.msra.mxu0 %v1376_v6 }
 0x3af   :  { %1124 = vmatprep.subr.mxu0 %v1299_v0 }
 0x3b0   :  { %1125 = vmatpush3.msra.mxu0 %v1387_v8 }
 0x3b1   :  { %1126 = vmatprep.subr.mxu0 %v1299_v0 }
 0x3b2   :  { %1127 = vmatpush3.msra.mxu0 %v1393_v9 }
 0x3b3   :  { %1128 = vmatprep.subr.mxu0 %v1299_v0 }
 0x3b4   :  { %1129 = vmatpush3.msra.mxu0 %v1400_v10 }
 0x3b5   :  { %1130 = vmatprep.subr.mxu0 %v1299_v0 }
 0x3b6   :  { %1131 = vmatpush3.msra.mxu0 %v1406_v11 }
 0x3b7   :  { %1132 = vmatprep.subr.mxu0 %v1299_v0 }
 0x3b8   :  { %1133 = vmatpush3.msra.mxu0 %v1412_v12 }
 0x3b9   :  { %1134 = vmatprep.subr.mxu0 %v1299_v0 }
 0x3ba   :  { %1135 = vmatpush3.msra.mxu0 %v1418_v13 }
 0x3bb   :  { %1136 = vmatprep.subr.mxu0 %v1299_v0 }
 0x3bc   :  { %1137 = vmatpush3.msra.mxu0 %v1424_v14 }
 0x3bd   :  { %1138 = vmatprep.subr.mxu0 %v1299_v0 }
 0x3be   :  { %1139 = vmatpush3.msra.mxu0 %v1430_v15 }
 0x3bf   :  { %1140 = vmatprep.subr.mxu0 %v1299_v0 }
 0x3c0   :  { %1141 = vmatpush3.msra.mxu0 %v1436_v17 }
 0x3c1   :  { %1142 = vmatprep.subr.mxu0 %v1299_v0 }
 0x3c2   :  { %1143 = vmatpush3.msra.mxu0 %v1442_v18 }
 0x463   :  { %v483_v61 = vpop.f32.mrf.mxu0 }
 0x464   :  { %v488_v63 = vadd.f32 %v487_v60, %v483_v61 }
 0x465   :  { %v1076_v7 = vpop.f32.mrf.mxu0 }
 0x466   :  { %v491_v16 = vadd.f32 %v490_v62, %v488_v63 }
 0x468   :  { %1200 = vtanh.f32 %v491_v16 }
 0x475   :  { %v1201_v19 = vpop.eup %1200 }
 0x476   :  { %v493_v21 = vmax.f32 %v1201_v19, 0.0 }
 0x478   :  { %v496_v22 = vadd.f32 %v495_v20, %v493_v21 }
 0x47a   :  { %498 = vst [vmem:[#allocation10 + $0x20] sm:$0xff] %v496_v22  ;;  %1110 = vmatmul.mubr.f32.vlgmr.msra.gmra.mxu1 %v496_v22 }
 0x47b   :  { %1148 = vmatpush3.msra.mxu1 %v1351_v1  ;;  %1179 = vmatprep.mubr.msk.f32.mxu1 %vm1300_vm0, %v1299_v0  ;;  %v569_v1 = vmul.f32 0.9, %v491_v16 }
 0x47c   :  { %1149 = vmatprep.subr.mxu1 %v1299_v0 }
 0x47d   :  { %1150 = vmatpush3.msra.mxu1 %v1353_v2 }
 0x47e   :  { %1151 = vmatprep.subr.mxu1 %v1299_v0 }
 0x47f   :  { %1152 = vmatpush3.msra.mxu1 %v1358_v3  ;;  %v572_v3 = vld [vmem:[#allocation4 + $0x28] sm:$0xff] }
 0x480   :  { %1153 = vmatprep.subr.mxu1 %v1299_v0 }
 0x481   :  { %1154 = vmatpush3.msra.mxu1 %v1364_v4 }
 0x482   :  { %1155 = vmatprep.subr.mxu1 %v1299_v0 }
 0x483   :  { %1156 = vmatpush3.msra.mxu1 %v1370_v5 }
 0x484   :  { %1157 = vmatprep.subr.mxu1 %v1299_v0 }
 0x485   :  { %1158 = vmatpush3.msra.mxu1 %v1376_v6 }
 0x486   :  { %1159 = vmatprep.subr.mxu1 %v1299_v0 }
 0x487   :  { %1160 = vmatpush3.msra.mxu1 %v1387_v8 }
 0x488   :  { %1161 = vmatprep.subr.mxu1 %v1299_v0 }
 0x489   :  { %1162 = vmatpush3.msra.mxu1 %v1393_v9  ;;  %v577_v9 = vld [vmem:[#allocation7 + $0x28] sm:$0xff] }
 0x48a   :  { %1163 = vmatprep.subr.mxu1 %v1299_v0 }
 0x48b   :  { %1164 = vmatpush3.msra.mxu1 %v1400_v10 }
 0x48c   :  { %1165 = vmatprep.subr.mxu1 %v1299_v0 }
 0x48d   :  { %1166 = vmatpush3.msra.mxu1 %v1406_v11 }
 0x48e   :  { %1167 = vmatprep.subr.mxu1 %v1299_v0 }
 0x48f   :  { %1168 = vmatpush3.msra.mxu1 %v1412_v12 }
 0x490   :  { %1169 = vmatprep.subr.mxu1 %v1299_v0 }
 0x491   :  { %1170 = vmatpush3.msra.mxu1 %v1418_v13 }
 0x492   :  { %1171 = vmatprep.subr.mxu1 %v1299_v0 }
 0x493   :  { %1172 = vmatpush3.msra.mxu1 %v1424_v14  ;;  %v654_v14 = vld [vmem:[#allocation4 + $0x30] sm:$0xff] }
 0x494   :  { %1173 = vmatprep.subr.mxu1 %v1299_v0 }
 0x495   :  { %1174 = vmatpush3.msra.mxu1 %v1430_v15 }
 0x496   :  { %1175 = vmatprep.subr.mxu1 %v1299_v0 }
 0x497   :  { %1176 = vmatpush3.msra.mxu1 %v1436_v17 }
 0x498   :  { %1177 = vmatprep.subr.mxu1 %v1299_v0 }
 0x499   :  { %1178 = vmatpush3.msra.mxu1 %v1442_v18 }
 0x53a   :  { %v565_v2 = vpop.f32.mrf.mxu1 }
 0x53b   :  { %v570_v4 = vadd.f32 %v569_v1, %v565_v2 }
 0x53c   :  { %v1111_v5 = vpop.f32.mrf.mxu1 }
 0x53d   :  { %v573_v6 = vadd.f32 %v572_v3, %v570_v4 }
 0x53f   :  { %1202 = vtanh.f32 %v573_v6  ;;  %v651_v12 = vmul.f32 0.9, %v573_v6 }
 0x54c   :  { %v1203_v8 = vpop.eup %1202 }
 0x54d   :  { %v575_v10 = vmax.f32 %v1203_v8, 0.0 }
 0x54f   :  { %v578_v11 = vadd.f32 %v577_v9, %v575_v10 }
 0x551   :  { %580 = vst [vmem:[#allocation10 + $0x28] sm:$0xff] %v578_v11  ;;  %1145 = vmatmul.mubr.f32.vlgmr.msra.gmra.mxu0 %v578_v11 }
 0x611   :  { %v647_v13 = vpop.f32.mrf.mxu0 }
 0x612   :  { %v652_v15 = vadd.f32 %v651_v12, %v647_v13 }
 0x613   :  { %v1146_v0 = vpop.f32.mrf.mxu0 }
 0x614   :  { %v655_v17 = vadd.f32 %v654_v14, %v652_v15 }
 0x616   :  { %1204 = vtanh.f32 %v655_v17  ;;  %v733_v26 = vmul.f32 0.9, %v655_v17 }
 0x623   :  { %v1205_v18 = vpop.eup %1204 }
 0x624   :  { %v657_v24 = vmax.f32 %v1205_v18, 0.0 }
 0x626   :  { %v660_v25 = vadd.f32 %v659_v23, %v657_v24 }
 0x628   :  { %662 = vst [vmem:[#allocation10 + $0x30] sm:$0xff] %v660_v25  ;;  %1180 = vmatmul.mubr.f32.vlgmr.msra.gmra.mxu1 %v660_v25 }
 0x6e8   :  { %v729_v27 = vpop.f32.mrf.mxu1 }
 0x6e9   :  { %v734_v29 = vadd.f32 %v733_v26, %v729_v27 }
 0x6ea   :  { %v1181_v30 = vpop.f32.mrf.mxu1 }
 0x6eb   :  { %v737_v31 = vadd.f32 %v736_v28, %v734_v29 }
 0x6ed   :  { %1206 = vtanh.f32 %v737_v31 }
 0x6fa   :  { %v1207_v32 = vpop.eup %1206 }
 0x6fb   :  { %v739_v34 = vmax.f32 %v1207_v32, 0.0 }
 0x6fd   :  { %v742_v35 = vadd.f32 %v741_v33, %v739_v34 }
 0x6ff   :  { %744 = vst [vmem:[#allocation10 + $0x38] sm:$0xff] %v742_v35 }
 0x700   :  { %1279 = shalt.err (!%p1276_p5)
}
 0x701   :  { %758 = dma.vmem_to_hbm [thread:$0]  %s753_s5, 1024, %s1666_s4, [#allocation6], %s1296_s20, %s1296_s20, %s1297_s21  }
 0x702   :  { %1292 = dma.done.wait [#allocation6], 1024  }
 0x703   :  { %1293 = vsyncadd [#allocation6], 4294966272 }
 0x704   :  { %762 = vsyncpa [#allocation5], 1 }
 0x705   :  { %763 = vsyncpa [#allocation8], 1 }
 0x706   :  { %764 = vsyncpa [#allocation6], 1 }

</bundles_post_ra>
